<compile_context>
chip_gen: v7x
topology: tpu7x:2x2x1
jax: 0.10.0
libtpu: 0.0.40
codegen_flags: <defaults>
</compile_context>

<pallas_src>
import jax
import jax.numpy as jnp
from jax.experimental import pallas as pl
from jax.experimental.pallas import tpu as pltpu

H = W = 64                      # module hardcodes a 64x64 mesh
ROWS, LANES = 32, 128           # lane-dense view: 64*64 == 32*128 (row-major reshape)
STEP = 2.0 / 63.0               # linspace(-1, 1, 64) step


def vdp_kernel(phi_ref, out_ref):
    # phi_ref: SMEM (2,) f32 scalars [phi1, phi2]
    # out_ref: VMEM (2, 32, 128) f32  -> [f1, f2] in the lane-dense layout
    phi1 = phi_ref[0]
    phi2 = phi_ref[1]
    step = jnp.float32(STEP)

    # Lane-dense (32,128) view of the flattened 64x64 mesh:
    #   flat k = i*64 + j  ->  r = k // 128, c = k % 128
    #   => column index j = c % 64   (drives xx)
    #      row index    i = 2*r + c // 64   (drives yy)
    lane = jax.lax.broadcasted_iota(jnp.int32, (1, LANES), 1)
    j_row = jnp.bitwise_and(lane, 63)                         # (1,128) column indices
    xx_row = j_row.astype(jnp.float32) * step - 1.0           # 64 distinct xx values

    # tanh(phi1*xx) only depends on the column index: one EUP pass on a single row,
    # then a cheap sublane broadcast.
    t1_row = 20.0 * jnp.tanh(phi1 * xx_row)                   # (1,128)
    xx = jnp.broadcast_to(xx_row, (ROWS, LANES))              # (32,128)
    t1 = jnp.broadcast_to(t1_row, (ROWS, LANES))              # (32,128)

    r_idx = jax.lax.broadcasted_iota(jnp.int32, (ROWS, LANES), 0)
    c_idx = jax.lax.broadcasted_iota(jnp.int32, (ROWS, LANES), 1)
    i_idx = 2 * r_idx + jax.lax.shift_right_logical(c_idx, 6)  # original row index
    yy = i_idx.astype(jnp.float32) * step - 1.0                # (32,128)

    control = t1 + 20.0 * jnp.tanh(phi2 * yy)
    f1 = 2.0 * yy
    f2 = -0.8 * xx + f1 + control - 10.0 * xx * xx * yy

    out_ref[0] = f1
    out_ref[1] = f2


def van_der_pol_forward(phi, v):
    """phi: (2,) f32 [phi1, phi2], v: (64,64) f32 -> (3,64,64) f32 = stack(f1, f2, v)."""
    f12 = pl.pallas_call(
        vdp_kernel,
        out_shape=jax.ShapeDtypeStruct((2, ROWS, LANES), jnp.float32),
        in_specs=[
            pl.BlockSpec(memory_space=pltpu.MemorySpace.SMEM),   # phi1, phi2 scalars
        ],
        out_specs=pl.BlockSpec(memory_space=pltpu.MemorySpace.VMEM),
    )(phi)
    f12 = f12.reshape(2, H, W)                      # contiguous reshape (free)
    # V is a pure pass-through in the module; stack it outside the kernel.
    return jnp.concatenate([f12, v[jnp.newaxis].astype(jnp.float32)], axis=0)


def reference_forward(phi, xx, yy, v):
    control = 20.0 * jnp.tanh(phi[0] * xx) + 20.0 * jnp.tanh(phi[1] * yy)
    f1 = 2.0 * yy
    f2 = -0.8 * xx + 2.0 * yy - 10.0 * xx * xx * yy + control
    return jnp.stack((f1, f2, v))


if __name__ == "__main__":
    key = jax.random.PRNGKey(0)
    k_phi, k_v = jax.random.split(key)

    # Deterministic parameter init (module uses torch.randn(()) for phi1/phi2).
    phi = jax.random.normal(k_phi, (2,), dtype=jnp.float32)

    # Example input V (the Lyapunov candidate values on the grid).
    v = jax.random.normal(k_v, (H, W), dtype=jnp.float32)

    out = van_der_pol_forward(phi, v)
    out = jax.block_until_ready(out)

    # Reference uses the exact meshgrid the PyTorch module builds ('xy' indexing).
    lin = jnp.linspace(-1.0, 1.0, 64, dtype=jnp.float32)
    xx, yy = jnp.meshgrid(lin, lin, indexing="xy")
    ref = reference_forward(phi, xx.astype(jnp.float32), yy.astype(jnp.float32), v)

    assert out.shape == (3, H, W), out.shape
    assert jnp.allclose(out, ref, atol=1e-4, rtol=1e-5), "mismatch vs reference"

    print("KERNEL_OK")
</pallas_src>

<mosaic_0001>
module attributes {stable_mosaic.version = 11 : i64} {
  func.func @vdp_kernel(%arg0: memref<2xf32, #tpu.memory_space<smem>>, %arg1: memref<2x32x128xf32, #tpu.memory_space<vmem>>) attributes {dimension_semantics = [], scalar_prefetch = 0 : i64, scratch_operands = 0 : i64, tpu.core_type = #tpu.core_type<tc>} {
    %c0 = arith.constant 0 : index
    %0 = memref.load %arg0[%c0] : memref<2xf32, #tpu.memory_space<smem>>
    %c1 = arith.constant 1 : index
    %1 = memref.load %arg0[%c1] : memref<2xf32, #tpu.memory_space<smem>>
    %2 = tpu.iota {dimensions = array<i32: 1>} : vector<1x128xi32>
    %c63_i32 = arith.constant 63 : i32
    %3 = vector.broadcast %c63_i32 : i32 to vector<1x128xi32>
    %4 = arith.andi %2, %3 : vector<1x128xi32>
    %5 = arith.sitofp %4 : vector<1x128xi32> to vector<1x128xf32>
    %cst = arith.constant 0.0317460336 : f32
    %6 = vector.broadcast %cst : f32 to vector<1x128xf32>
    %7 = arith.mulf %5, %6 : vector<1x128xf32>
    %cst_0 = arith.constant 1.000000e+00 : f32
    %8 = vector.broadcast %cst_0 : f32 to vector<1x128xf32>
    %9 = arith.subf %7, %8 : vector<1x128xf32>
    %10 = vector.broadcast %0 : f32 to vector<1x128xf32>
    %11 = arith.mulf %10, %9 : vector<1x128xf32>
    %12 = math.tanh %11 : vector<1x128xf32>
    %cst_1 = arith.constant 2.000000e+01 : f32
    %13 = vector.broadcast %cst_1 : f32 to vector<1x128xf32>
    %14 = arith.mulf %13, %12 : vector<1x128xf32>
    %15 = vector.shape_cast %9 : vector<1x128xf32> to vector<1x128xf32>
    %16 = vector.broadcast %15 : vector<1x128xf32> to vector<32x128xf32>
    %17 = vector.shape_cast %14 : vector<1x128xf32> to vector<1x128xf32>
    %18 = vector.broadcast %17 : vector<1x128xf32> to vector<32x128xf32>
    %19 = tpu.iota {dimensions = array<i32: 0>} : vector<32x128xi32>
    %20 = tpu.iota {dimensions = array<i32: 1>} : vector<32x128xi32>
    %c2_i32 = arith.constant 2 : i32
    %21 = vector.broadcast %c2_i32 : i32 to vector<32x128xi32>
    %22 = arith.muli %21, %19 : vector<32x128xi32>
    %c6_i32 = arith.constant 6 : i32
    %23 = vector.broadcast %c6_i32 : i32 to vector<32x128xi32>
    %24 = arith.shrui %20, %23 : vector<32x128xi32>
    %25 = arith.addi %22, %24 : vector<32x128xi32>
    %26 = arith.sitofp %25 : vector<32x128xi32> to vector<32x128xf32>
    %cst_2 = arith.constant 0.0317460336 : f32
    %27 = vector.broadcast %cst_2 : f32 to vector<32x128xf32>
    %28 = arith.mulf %26, %27 : vector<32x128xf32>
    %cst_3 = arith.constant 1.000000e+00 : f32
    %29 = vector.broadcast %cst_3 : f32 to vector<32x128xf32>
    %30 = arith.subf %28, %29 : vector<32x128xf32>
    %31 = vector.broadcast %1 : f32 to vector<32x128xf32>
    %32 = arith.mulf %31, %30 : vector<32x128xf32>
    %33 = math.tanh %32 : vector<32x128xf32>
    %cst_4 = arith.constant 2.000000e+01 : f32
    %34 = vector.broadcast %cst_4 : f32 to vector<32x128xf32>
    %35 = arith.mulf %34, %33 : vector<32x128xf32>
    %36 = arith.addf %18, %35 : vector<32x128xf32>
    %cst_5 = arith.constant 2.000000e+00 : f32
    %37 = vector.broadcast %cst_5 : f32 to vector<32x128xf32>
    %38 = arith.mulf %37, %30 : vector<32x128xf32>
    %cst_6 = arith.constant -8.000000e-01 : f32
    %39 = vector.broadcast %cst_6 : f32 to vector<32x128xf32>
    %40 = arith.mulf %39, %16 : vector<32x128xf32>
    %41 = arith.addf %40, %38 : vector<32x128xf32>
    %42 = arith.addf %41, %36 : vector<32x128xf32>
    %cst_7 = arith.constant 1.000000e+01 : f32
    %43 = vector.broadcast %cst_7 : f32 to vector<32x128xf32>
    %44 = arith.mulf %43, %16 : vector<32x128xf32>
    %45 = arith.mulf %44, %16 : vector<32x128xf32>
    %46 = arith.mulf %45, %30 : vector<32x128xf32>
    %47 = arith.subf %42, %46 : vector<32x128xf32>
    %c0_8 = arith.constant 0 : index
    %c0_9 = arith.constant 0 : index
    %c0_10 = arith.constant 0 : index
    %48 = vector.load %arg1[%c0_8, %c0_9, %c0_10] : memref<2x32x128xf32, #tpu.memory_space<vmem>>, vector<1x32x128xf32>
    %49 = vector.shape_cast %48 : vector<1x32x128xf32> to vector<32x128xf32>
    %50 = vector.shape_cast %38 : vector<32x128xf32> to vector<1x32x128xf32>
    tpu.vector_store %arg1[%c0_8, %c0_9, %c0_10], %50 {strides = array<i32>} : memref<2x32x128xf32, #tpu.memory_space<vmem>>, vector<1x32x128xf32>,
    %c1_11 = arith.constant 1 : index
    %c0_12 = arith.constant 0 : index
    %c0_13 = arith.constant 0 : index
    %51 = vector.load %arg1[%c1_11, %c0_12, %c0_13] : memref<2x32x128xf32, #tpu.memory_space<vmem>>, vector<1x32x128xf32>
    %52 = vector.shape_cast %51 : vector<1x32x128xf32> to vector<32x128xf32>
    %53 = vector.shape_cast %47 : vector<32x128xf32> to vector<1x32x128xf32>
    tpu.vector_store %arg1[%c1_11, %c0_12, %c0_13], %53 {strides = array<i32>} : memref<2x32x128xf32, #tpu.memory_space<vmem>>, vector<1x32x128xf32>,
    return
  }
}

</mosaic_0001>

<bundles_post_ra>
// kernel: tpu_custom_call.1
= control target key start
LH: loop header
LB: loop body
LE: loop exit
PB: predicated region body
PF: predicated region fallthrough
CT: control target
= control target key end

     0   :  { %6 = vsyncpa [#allocation4], 0  ;;  %s218_s0 = inlined_call_operand.hbm [shape: f32[2], index: 0, kind: input, shape index: {}]   ;;  %s219_s1 = inlined_call_operand.hbm [shape: f32[2,32,128], index: 1, kind: output, shape index: {}]  }
   0x1   :  { %7 = vsyncpa [#allocation3], 0  ;;  %s144_s8 = scalar_lea.hbm %s218_s0, 16 }
   0x2   :  { %p145_p0 = scmp.ne.s32.totalorder %s218_s0, %s144_s8  ;;  %p148_p1 = scmp.lt.u32.totalorder %s144_s8, %s218_s0 }
   0x4   :  { %p150_p2 = pnand %p148_p1, %p145_p0 }
   0x6   :  { %153 = shalt.err (!%p150_p2)
}
   0x7   :  { %s180_s13 = smov [#allocation2]  }
   0x8   :  { %15 = dma.hbm_to_smem %s218_s0, 16, %s180_s13, [#allocation4]  }
   0x9   :  { %176 = dma.done.wait [#allocation4], 16  }
   0xa   :  { %177 = vsyncadd [#allocation4], 4294967280 }
   0xb   :  { %19 = sfence }
   0xc   :  { %v22_v0 = vlaneseq  ;;  %s20_s16 = sld [smem:[#allocation2]]  ;;  %s124_s17 = sld [smem:[#allocation2 + $0x1]] }
   0xd   :  { %s181_s0 = smov [#allocation5]  }
   0xe   :  { %v23_v1 = vand.u32 127, %v22_v0  ;;  %v33_v2 = vshrl.u32 %v22_v0, 7  ;;  %s112_s18 = sshll.u32 %s181_s0, 4  ;;  %s113_s18 = int_to_ptr.vmem [resolvable:$true] %s112_s18 }
   0xf   :  { %s154_s19 = scalar_lea.vmem %s113_s18, 1024  ;;  %p159_p4 = scmp.lt.s32.totalorder %s113_s18, %s113_s18 }
  0x10   :  { %v24_v3 = vand.u32 63, %v23_v1  ;;  %v37_v4 = vmul.u32 2, %v33_v2  ;;  %v41_v5 = vshrl.u32 %v23_v1, 6  ;;  %v34_v6 = vadd.s32 8, %v33_v2  ;;  %p155_p3 = scmp.ne.s32.totalorder %s113_s18, %s154_s19  ;;  %p160_p5 = scmp.lt.s32.totalorder %s154_s19, %s154_s19 }
  0x11   :  { %v35_v7 = vadd.s32 16, %v33_v2  ;;  %v36_v8 = vadd.s32 24, %v33_v2 }
  0x12   :  { %v25_v9 = vcvt.s32.f32 %v24_v3  ;;  %v42_v10 = vadd.s32 %v41_v5, %v37_v4  ;;  %v38_v11 = vmul.u32 2, %v34_v6  ;;  %v28_v19 = vstv %s20_s16  ;;  %p161_p6 = por %p160_p5, %p159_p4 }
  0x13   :  { %v39_v12 = vmul.u32 2, %v35_v7  ;;  %v40_v13 = vmul.u32 2, %v36_v8  ;;  %v58_v25 = vstv %s124_s17 }
  0x14   :  { %v26_v14 = vmul.f32 0.031746034, %v25_v9  ;;  %v46_v15 = vcvt.s32.f32 %v42_v10  ;;  %v43_v16 = vadd.s32 %v41_v5, %v38_v11  ;;  %p162_p7 = pnand %p161_p6, %p155_p3 }
  0x15   :  { %v44_v17 = vadd.s32 %v41_v5, %v39_v12  ;;  %v45_v18 = vadd.s32 %v41_v5, %v40_v13 }
  0x16   :  { %v125_v20 = vadd.f32 -1.0, %v26_v14  ;;  %v50_v21 = vmul.f32 0.031746034, %v46_v15  ;;  %v47_v22 = vcvt.s32.f32 %v43_v16 }
  0x17   :  { %v48_v23 = vcvt.s32.f32 %v44_v17  ;;  %v49_v24 = vcvt.s32.f32 %v45_v18 }
  0x18   :  { %v126_v26 = vadd.f32 -1.0, %v50_v21  ;;  %v51_v27 = vmul.f32 0.031746034, %v47_v22  ;;  %v29_v28 = vmul.f32 %v125_v20, %v28_v19  ;;  %v88_v42 = vmul.f32 10.0, %v125_v20 }
  0x19   :  { %v52_v29 = vmul.f32 0.031746034, %v48_v23  ;;  %v53_v30 = vmul.f32 0.031746034, %v49_v24  ;;  %v79_v43 = vmul.f32 -0.8, %v125_v20 }
  0x1a   :  { %v75_v31 = vmul.f32 2.0, %v126_v26  ;;  %v127_v32 = vadd.f32 -1.0, %v51_v27  ;;  %134 = vtanh.f32 %v29_v28  ;;  %v59_v33 = vmul.f32 %v126_v26, %v58_v25 }
  0x1b   :  { %v128_v34 = vadd.f32 -1.0, %v52_v29  ;;  %v129_v35 = vadd.f32 -1.0, %v53_v30  ;;  %v89_v46 = vmul.f32 %v125_v20, %v88_v42 }
  0x1c   :  { %98 = vst [vmem:[#allocation5] sm:$0xff] %v75_v31  ;;  %v76_v36 = vmul.f32 2.0, %v127_v32  ;;  %136 = vtanh.f32 %v59_v33  ;;  %v60_v37 = vmul.f32 %v127_v32, %v58_v25  ;;  %v80_v48 = vadd.f32 %v79_v43, %v75_v31 }
  0x1d   :  { %v77_v38 = vmul.f32 2.0, %v128_v34  ;;  %v78_v39 = vmul.f32 2.0, %v129_v35  ;;  %v61_v40 = vmul.f32 %v128_v34, %v58_v25  ;;  %v62_v41 = vmul.f32 %v129_v35, %v58_v25 }
  0x1e   :  { %99 = vst [vmem:[#allocation5 + $0x8] sm:$0xff] %v76_v36  ;;  %138 = vtanh.f32 %v60_v37  ;;  %v81_v51 = vadd.f32 %v79_v43, %v76_v36  ;;  %v90_v53 = vmul.f32 %v126_v26, %v89_v46  ;;  %v91_v56 = vmul.f32 %v127_v32, %v89_v46 }
  0x1f   :  { %100 = vst [vmem:[#allocation5 + $0x10] sm:$0xff] %v77_v38  ;;  %101 = vst [vmem:[#allocation5 + $0x18] sm:$0xff] %v78_v39  ;;  %140 = vtanh.f32 %v61_v40  ;;  %v82_v58 = vadd.f32 %v79_v43, %v77_v38  ;;  %v83_v62 = vadd.f32 %v79_v43, %v78_v39  ;;  %v92_v3 = vmul.f32 %v128_v34, %v89_v46 }
  0x20   :  { %142 = vtanh.f32 %v62_v41  ;;  %v93_v5 = vmul.f32 %v129_v35, %v89_v46 }
  0x24   :  { %v135_v44 = vpop.eup %134 }
  0x25   :  { %v31_v45 = vmul.f32 20.0, %v135_v44 }
  0x26   :  { %v137_v47 = vpop.eup %136 }
  0x27   :  { %v67_v49 = vmul.f32 20.0, %v137_v47 }
  0x28   :  { %v139_v50 = vpop.eup %138 }
  0x29   :  { %v71_v52 = vadd.f32 %v67_v49, %v31_v45  ;;  %v68_v54 = vmul.f32 20.0, %v139_v50  ;;  %v141_v55 = vpop.eup %140 }
  0x2a   :  { %v143_v57 = vpop.eup %142  ;;  %v69_v61 = vmul.f32 20.0, %v141_v55 }
  0x2b   :  { %v84_v59 = vadd.f32 %v80_v48, %v71_v52  ;;  %v72_v60 = vadd.f32 %v68_v54, %v31_v45  ;;  %v70_v63 = vmul.f32 20.0, %v143_v57 }
  0x2c   :  { %v73_v2 = vadd.f32 %v69_v61, %v31_v45 }
  0x2d   :  { %v94_v0 = vsub.f32 %v84_v59, %v90_v53  ;;  %v85_v1 = vadd.f32 %v81_v51, %v72_v60  ;;  %v74_v4 = vadd.f32 %v70_v63, %v31_v45 }
  0x2e   :  { %v86_v7 = vadd.f32 %v82_v58, %v73_v2 }
  0x2f   :  { %103 = vst [vmem:[#allocation5 + $0x20] sm:$0xff] %v94_v0  ;;  %v95_v6 = vsub.f32 %v85_v1, %v91_v56  ;;  %v87_v8 = vadd.f32 %v83_v62, %v74_v4 }
  0x30   :  { %v96_v9 = vsub.f32 %v86_v7, %v92_v3 }
  0x31   :  { %104 = vst [vmem:[#allocation5 + $0x28] sm:$0xff] %v95_v6  ;;  %v97_v10 = vsub.f32 %v87_v8, %v93_v5 }
  0x32   :  { %105 = vst [vmem:[#allocation5 + $0x30] sm:$0xff] %v96_v9 }
  0x33   :  { %106 = vst [vmem:[#allocation5 + $0x38] sm:$0xff] %v97_v10 }
  0x34   :  { %165 = shalt.err (!%p162_p7)
}
  0x35   :  { %s166_s22 = scalar_lea.hbm %s219_s1, 1024 }
  0x36   :  { %p167_p8 = scmp.ne.s32.totalorder %s219_s1, %s166_s22  ;;  %p170_p9 = scmp.lt.u32.totalorder %s166_s22, %s219_s1 }
  0x38   :  { %p172_p10 = pnand %p170_p9, %p167_p8 }
  0x3a   :  { %175 = shalt.err (!%p172_p10)
}
  0x3b   :  { %s182_s27 = smov 128   ;;  %s183_s28 = smov 8  }
  0x3c   :  { %118 = dma.vmem_to_hbm [thread:$0]  %s113_s18, 1024, %s219_s1, [#allocation3], %s182_s27, %s182_s27, %s183_s28  }
  0x3d   :  { %178 = dma.done.wait [#allocation3], 1024  }
  0x3e   :  { %179 = vsyncadd [#allocation3], 4294966272 }
  0x3f   :  { %122 = vsyncpa [#allocation3], 1 }
  0x40   :  { %123 = vsyncpa [#allocation4], 1 }

</bundles_post_ra>
